<compile_context>
chip_gen: v7x
topology: tpu7x:2x2x1
jax: 0.10.0
libtpu: 0.0.40
codegen_flags: <defaults>
</compile_context>

<pallas_src>
import functools

import jax
import jax.numpy as jnp
import numpy as np
from jax.experimental import pallas as pl
from jax.experimental.pallas import tpu as pltpu


# ----------------------------------------------------------------------------
# Kernel: one grid step = (query-row tile t, source-column tile s), ALL heads.
#   inputs (bf16): q (H,tT,dK), k (H,tS,dK), v (H,tS,dV), wz (H,dV,E),
#                  [bias (H,tT,tS)], [mask (tT,tS)]
#   output: (tT, E) f32
#   scratch: m (H,tT,1) f32, l (H,tT,1) f32, acc (H,tT,dV) f32
# ----------------------------------------------------------------------------
def _mha_kernel(has_bias, has_mask, *refs):
    refs = list(refs)
    q_ref, k_ref, v_ref, wz_ref = refs[:4]
    i = 4
    bias_ref = None
    mask_ref = None
    if has_bias:
        bias_ref = refs[i]; i += 1
    if has_mask:
        mask_ref = refs[i]; i += 1
    out_ref, m_sc, l_sc, acc_sc = refs[i:i + 4]

    s_idx = pl.program_id(1)

    @pl.when(s_idx == 0)
    def _():
        # finite sentinel (not -inf) keeps fully-masked rows NaN-free
        m_sc[...] = jnp.full_like(m_sc, -1e30)
        l_sc[...] = jnp.zeros_like(l_sc)
        acc_sc[...] = jnp.zeros_like(acc_sc)

    # Logits for all heads at once: batched matmul over the leading head axis.
    z = jnp.einsum('htd,hsd->hts', q_ref[...], k_ref[...],
                   preferred_element_type=jnp.float32)            # (H,tT,tS) f32
    if has_bias:
        z = z + bias_ref[...].astype(jnp.float32)
    if has_mask:
        z = z + mask_ref[...].astype(jnp.float32)[None, :, :]

    # Online (flash-style) softmax update across S tiles.
    m_prev = m_sc[...]
    m_new = jnp.maximum(m_prev, jnp.max(z, axis=-1, keepdims=True))
    alpha = jnp.exp(m_prev - m_new)
    p = jnp.exp(z - m_new)
    l_sc[...] = alpha * l_sc[...] + jnp.sum(p, axis=-1, keepdims=True)
    acc_sc[...] = alpha * acc_sc[...] + jnp.einsum(
        'hts,hsd->htd', p.astype(jnp.bfloat16), v_ref[...],
        preferred_element_type=jnp.float32)
    m_sc[...] = m_new

    @pl.when(s_idx == pl.num_programs(1) - 1)
    def _():
        l = jnp.maximum(l_sc[...], 1e-30)
        zn = acc_sc[...] * pl.reciprocal(l, approx=True)          # (H,tT,dV) f32
        # Output projection: per-head (tT,dV)x(dV,E) batched matmul, VPU sum over heads.
        oz = jnp.einsum('htd,hde->hte', zn.astype(jnp.bfloat16), wz_ref[...],
                        preferred_element_type=jnp.float32)       # (H,tT,E)
        out_ref[...] = jnp.sum(oz, axis=0)


# ----------------------------------------------------------------------------
# Relative-position logits (Huang et al. skew trick) — plain JAX glue.
# TODO(synk): no clean tile-aligned in-kernel form for the skew pad/reshape yet;
#             the small bmm stays in glue and the result is streamed as bf16 bias.
# ----------------------------------------------------------------------------
def _skew_lower(logits):
    H, T, _ = logits.shape
    x = jnp.pad(logits, ((0, 0), (0, 0), (1, 0)))
    x = x.reshape(H, T + 1, T)[:, 1:, :]
    return jnp.tril(x)


def _skew_upper(logits):
    H, T, _ = logits.shape
    x = jnp.pad(logits, ((0, 0), (0, 0), (0, 1)))
    x = x.reshape(H, T + 1, T)[:, :-1, :]
    return jnp.triu(x, k=1)


def relative_bias(queries_hv, rpe_neg, rpe_pos, max_dist):
    # queries_hv: (H, T, dK); rpe_neg: (H, dK, C+1); rpe_pos: (H, dK, C)
    H, T, dK = queries_hv.shape
    C = max_dist
    if T <= C + 1:
        r_l = rpe_neg[:, :, -T:]
    else:
        pad = T - C - 1
        r_l = jnp.concatenate(
            [jnp.repeat(rpe_neg[:, :, :1], pad, axis=2), rpe_neg], axis=2)
    l_lower = _skew_lower(jnp.einsum('htk,hks->hts', queries_hv, r_l))

    if T <= C + 1:
        r_u = rpe_pos[:, :, :T - 1]
    else:
        pad = T - C - 1
        r_u = jnp.concatenate(
            [rpe_pos, jnp.repeat(rpe_pos[:, :, -1:], pad, axis=2)], axis=2)
    r_u = jnp.pad(r_u, ((0, 0), (0, 0), (1, 0)))
    l_upper = _skew_upper(jnp.einsum('htk,hks->hts', queries_hv, r_u))
    return l_lower + l_upper


# ----------------------------------------------------------------------------
# Wrapper
# ----------------------------------------------------------------------------
def multihead_attention(source, target, params, attention_mask=None,
                        embed_relative_positions=False,
                        max_relative_distance=None):
    S, E = source.shape
    T, _ = target.shape
    H, dK, dV = params['H'], params['dK'], params['dV']
    rpe = bool(embed_relative_positions)
    f32, bf16 = jnp.float32, jnp.bfloat16

    # ---- Q/K/V projections hoisted out of the kernel (single XLA matmuls). ----
    scale = float(dK) ** -0.5
    wq = params['Wq'].astype(f32) * scale                       # fold 1/sqrt(dK) into Wq
    q_all = target.astype(f32) @ wq                             # (T, H*dK), pre-scaled
    k_all = source.astype(f32) @ params['Wk'].astype(f32)       # (S, H*dK)
    v_all = source.astype(f32) @ params['Wv'].astype(f32)       # (S, H*dV)

    # Head-leading layout (H, seq, d): leading-axis indexing only, no lane slicing.
    q_hd = q_all.T.reshape(H, dK, T).transpose(0, 2, 1).astype(bf16)   # (H, T, dK)
    k_hd = k_all.T.reshape(H, dK, S).transpose(0, 2, 1).astype(bf16)   # (H, S, dK)
    v_hd = v_all.T.reshape(H, dV, S).transpose(0, 2, 1).astype(bf16)   # (H, S, dV)
    wz_h = params['Wz'].astype(bf16).reshape(H, dV, E)                 # (H, dV, E)

    bias = None
    if rpe:
        q_hv = q_all.T.reshape(H, dK, T).transpose(0, 2, 1)            # f32, pre-scaled
        bias = relative_bias(q_hv, params['rpe_neg'], params['rpe_pos'],
                             max_relative_distance)                    # (H, T, S) f32

    # ---- Tiling: tT<=128 query rows ("parallel"), tS<=512 source cols ("arbitrary"). ----
    def rup(x, m):
        return ((x + m - 1) // m) * m

    tT = min(rup(T, 8), 128)          # 128 also fits v7x's smaller (64 MiB) VMEM
    T_pad = rup(T, tT)
    tS = 512 if S > 512 else S
    S_pad = rup(S, tS)
    nT, nS = T_pad // tT, S_pad // tS

    # Combined additive extras: user mask + S-padding mask (folded into bias when rpe).
    extra = None
    if attention_mask is not None:
        extra = jnp.zeros((T_pad, S_pad), f32).at[:T, :S].set(attention_mask.astype(f32))
    if S_pad != S:
        col_pad = jnp.where(jnp.arange(S_pad) < S, 0.0, -jnp.inf).astype(f32)[None, :]
        extra = col_pad if extra is None else extra + col_pad

    if T_pad != T:
        q_hd = jnp.pad(q_hd, ((0, 0), (0, T_pad - T), (0, 0)))
    if S_pad != S:
        k_hd = jnp.pad(k_hd, ((0, 0), (0, S_pad - S), (0, 0)))
        v_hd = jnp.pad(v_hd, ((0, 0), (0, S_pad - S), (0, 0)))

    if rpe:
        bias = jnp.pad(bias, ((0, 0), (0, T_pad - T), (0, S_pad - S)))
        if extra is not None:
            bias = bias + extra[None, :, :]      # one streamed slab instead of two
            extra = None
        bias = bias.astype(bf16)

    has_bias = bias is not None
    has_mask = extra is not None

    args = [q_hd, k_hd, v_hd, wz_h]
    in_specs = [
        pl.BlockSpec((H, tT, dK), lambda t, s: (0, t, 0)),
        pl.BlockSpec((H, tS, dK), lambda t, s: (0, s, 0)),
        pl.BlockSpec((H, tS, dV), lambda t, s: (0, s, 0)),
        pl.BlockSpec((H, dV, E), lambda t, s: (0, 0, 0)),
    ]
    if has_bias:
        args.append(bias)
        in_specs.append(pl.BlockSpec((H, tT, tS), lambda t, s: (0, t, s)))
    if has_mask:
        args.append(extra.astype(bf16))                          # bf16 stream (-inf ok)
        in_specs.append(pl.BlockSpec((tT, tS), lambda t, s: (t, s)))

    kernel = functools.partial(_mha_kernel, has_bias, has_mask)
    out = pl.pallas_call(
        kernel,
        out_shape=jax.ShapeDtypeStruct((T_pad, E), f32),
        grid=(nT, nS),
        in_specs=in_specs,
        out_specs=pl.BlockSpec((tT, E), lambda t, s: (t, 0)),
        scratch_shapes=[
            pltpu.VMEM((H, tT, 1), f32),     # running max m
            pltpu.VMEM((H, tT, 1), f32),     # running sum l
            pltpu.VMEM((H, tT, dV), f32),    # running accumulator
        ],
        compiler_params=pltpu.CompilerParams(
            dimension_semantics=("parallel", "arbitrary")),
    )(*args)
    return out[:T] if T_pad != T else out


# ----------------------------------------------------------------------------
# Pure-JAX f32 reference mirroring the PyTorch module (for correctness check)
# ----------------------------------------------------------------------------
def reference(source, target, params, attention_mask, embed_rel, max_dist):
    H, dK, dV = params['H'], params['dK'], params['dV']
    keys = source @ params['Wk']
    values = source @ params['Wv']
    queries = target @ params['Wq']
    k_t = keys.T.reshape(H, dK, -1)                         # (H, dK, S)
    q = queries.T.reshape(H, dK, -1).transpose(0, 2, 1)     # (H, T, dK)
    v = values.T.reshape(H, dV, -1).transpose(0, 2, 1)      # (H, S, dV)
    z = jnp.einsum('htk,hks->hts', q, k_t)
    if embed_rel:
        z = z + relative_bias(q, params['rpe_neg'], params['rpe_pos'], max_dist)
    z = z * (float(dK) ** -0.5)
    if attention_mask is not None:
        z = z + attention_mask
    z = jax.nn.softmax(z, axis=-1)
    z = jnp.einsum('hts,hsv->htv', z, v)
    z = jnp.concatenate(list(z), axis=1)                    # (T, H*dV)
    return z @ params['Wz']


# ----------------------------------------------------------------------------
# Deterministic parameter init (synthetic; no checkpoint load)
# ----------------------------------------------------------------------------
def init_params(key, E, H, dK, dV, C):
    ks = jax.random.split(key, 6)

    def lin(k, fan_in, fan_out):
        bound = 1.0 / np.sqrt(fan_in)
        return jax.random.uniform(k, (fan_in, fan_out), jnp.float32, -bound, bound)

    def xavier(k, shape):
        fan_in = shape[1] * shape[2]
        fan_out = shape[0] * shape[2]
        bound = np.sqrt(6.0 / (fan_in + fan_out))
        return jax.random.uniform(k, shape, jnp.float32, -bound, bound)

    return {
        'H': H, 'dK': dK, 'dV': dV,
        'Wq': lin(ks[0], E, H * dK),
        'Wk': lin(ks[1], E, H * dK),
        'Wv': lin(ks[2], E, H * dV),
        'Wz': lin(ks[3], H * dV, E),
        'rpe_neg': xavier(ks[4], (H, dK, C + 1)),
        'rpe_pos': xavier(ks[5], (H, dK, C)),
    }


if __name__ == "__main__":
    E, H, dK, dV = 32, 4, 8, 8
    C = 4                      # max relative distance (T > C+1 exercises replicate-pad path)

    key = jax.random.PRNGKey(0)
    k_src, k_tgt, k_par, k_src2, k_tgt2 = jax.random.split(key, 5)
    params = init_params(k_par, E, H, dK, dV, C)

    def causal(T, S):
        row = jnp.arange(T)[:, None]
        col = jnp.arange(S)[None, :]
        return jnp.where(col <= row, 0.0, -jnp.inf).astype(jnp.float32)

    def check(S, T, ks, kt, use_rpe, use_mask, tol=2e-2):
        src = jax.random.normal(ks, (S, E), jnp.float32)
        tgt = jax.random.normal(kt, (T, E), jnp.float32)
        mask = causal(T, S) if use_mask else None
        out = multihead_attention(src, tgt, params, attention_mask=mask,
                                  embed_relative_positions=use_rpe,
                                  max_relative_distance=C)
        out = jax.block_until_ready(out)
        ref = reference(src, tgt, params, mask, use_rpe, C)
        np.testing.assert_allclose(np.asarray(out), np.asarray(ref), rtol=tol, atol=tol)

    # 1: relative positions + causal mask (mask folded into the single bias slab)
    check(8, 8, k_src, k_tgt, True, True)
    # 2: no relative positions, no mask (bare kernel variant)
    check(8, 8, k_src, k_tgt, False, False)
    # 3: no relative positions, causal mask (streamed bf16 mask path)
    check(8, 8, k_src, k_tgt, False, True)
    # 4: larger T=S (non-multiple of 128) exercising T padding + multi-tile parallel grid
    check(200, 200, k_src2, k_tgt2, True, True, tol=3e-2)

    print("KERNEL_OK")
</pallas_src>

<mosaic_0001>
module attributes {stable_mosaic.version = 11 : i64} {
  func.func @_mha_kernel(%arg0: i32, %arg1: i32, %arg2: memref<4x8x8xbf16, #tpu.memory_space<vmem>>, %arg3: memref<4x8x8xbf16, #tpu.memory_space<vmem>>, %arg4: memref<4x8x8xbf16, #tpu.memory_space<vmem>>, %arg5: memref<4x8x32xbf16, #tpu.memory_space<vmem>>, %arg6: memref<4x8x8xbf16, #tpu.memory_space<vmem>>, %arg7: memref<8x32xf32, #tpu.memory_space<vmem>>, %arg8: memref<4x8x1xf32, #tpu.memory_space<vmem>>, %arg9: memref<4x8x1xf32, #tpu.memory_space<vmem>>, %arg10: memref<4x8x8xf32, #tpu.memory_space<vmem>>) attributes {dimension_semantics = [#tpu.dimension_semantics<parallel>, #tpu.dimension_semantics<arbitrary>], iteration_bounds = array<i64: 1, 1>, scalar_prefetch = 0 : i64, scratch_operands = 3 : i64, tpu.core_type = #tpu.core_type<tc>, window_params = [{transform_indices = @transform_0, window_bounds = array<i64: 4, 8, 8>}, {transform_indices = @transform_1, window_bounds = array<i64: 4, 8, 8>}, {transform_indices = @transform_2, window_bounds = array<i64: 4, 8, 8>}, {pipeline_mode = #tpu.pipeline_mode<synchronous>, transform_indices = @transform_3, window_bounds = array<i64: 4, 8, 32>}, {transform_indices = @transform_4, window_bounds = array<i64: 4, 8, 8>}, {transform_indices = @transform_5, window_bounds = array<i64: 8, 32>}]} {
    %c0_i32 = arith.constant 0 : i32
    %0 = arith.cmpi eq, %arg1, %c0_i32 : i32
    %1 = arith.extui %0 : i1 to i32
    %c0_i32_0 = arith.constant 0 : i32
    %2 = arith.cmpi ne, %1, %c0_i32_0 : i32
    scf.if %2 {
      %cst_35 = arith.constant -1.000000e+30 : f32
      %36 = vector.broadcast %cst_35 : f32 to vector<4x8x1xf32>
      %c0_36 = arith.constant 0 : index
      %c0_37 = arith.constant 0 : index
      %c0_38 = arith.constant 0 : index
      %37 = vector.load %arg8[%c0_36, %c0_37, %c0_38] : memref<4x8x1xf32, #tpu.memory_space<vmem>>, vector<4x8x1xf32>
      tpu.vector_store %arg8[%c0_36, %c0_37, %c0_38], %36 {strides = array<i32>} : memref<4x8x1xf32, #tpu.memory_space<vmem>>, vector<4x8x1xf32>,
      %cst_39 = arith.constant 0.000000e+00 : f32
      %38 = vector.broadcast %cst_39 : f32 to vector<4x8x1xf32>
      %c0_40 = arith.constant 0 : index
      %c0_41 = arith.constant 0 : index
      %c0_42 = arith.constant 0 : index
      %39 = vector.load %arg9[%c0_40, %c0_41, %c0_42] : memref<4x8x1xf32, #tpu.memory_space<vmem>>, vector<4x8x1xf32>
      tpu.vector_store %arg9[%c0_40, %c0_41, %c0_42], %38 {strides = array<i32>} : memref<4x8x1xf32, #tpu.memory_space<vmem>>, vector<4x8x1xf32>,
      %cst_43 = arith.constant 0.000000e+00 : f32
      %40 = vector.broadcast %cst_43 : f32 to vector<4x8x8xf32>
      %c0_44 = arith.constant 0 : index
      %c0_45 = arith.constant 0 : index
      %c0_46 = arith.constant 0 : index
      %41 = vector.load %arg10[%c0_44, %c0_45, %c0_46] : memref<4x8x8xf32, #tpu.memory_space<vmem>>, vector<4x8x8xf32>
      tpu.vector_store %arg10[%c0_44, %c0_45, %c0_46], %40 {strides = array<i32>} : memref<4x8x8xf32, #tpu.memory_space<vmem>>, vector<4x8x8xf32>,
    } else {
    }
    %c0 = arith.constant 0 : index
    %c0_1 = arith.constant 0 : index
    %c0_2 = arith.constant 0 : index
    %3 = vector.load %arg2[%c0, %c0_1, %c0_2] : memref<4x8x8xbf16, #tpu.memory_space<vmem>>, vector<4x8x8xbf16>
    %c0_3 = arith.constant 0 : index
    %c0_4 = arith.constant 0 : index
    %c0_5 = arith.constant 0 : index
    %4 = vector.load %arg3[%c0_3, %c0_4, %c0_5] : memref<4x8x8xbf16, #tpu.memory_space<vmem>>, vector<4x8x8xbf16>
    "tpu.trace_start"() <{level = 10 : i32, message = "htd,hsd->hts"}> : () -> ()
    %cst = arith.constant dense<0.000000e+00> : vector<4x8x8xf32>
    %5 = tpu.matmul %3, %4, %cst {dimension_numbers = #tpu.dot_dimension_numbers<[2], [2], [1], [1], [0, 0, 0, 1, 1, 1], [0], [0]>} : vector<4x8x8xbf16>, vector<4x8x8xbf16>, vector<4x8x8xf32> -> vector<4x8x8xf32>
    "tpu.trace_stop"() : () -> ()
    %c0_6 = arith.constant 0 : index
    %c0_7 = arith.constant 0 : index
    %c0_8 = arith.constant 0 : index
    %6 = vector.load %arg6[%c0_6, %c0_7, %c0_8] : memref<4x8x8xbf16, #tpu.memory_space<vmem>>, vector<4x8x8xbf16>
    %7 = arith.extf %6 : vector<4x8x8xbf16> to vector<4x8x8xf32>
    %8 = arith.addf %5, %7 : vector<4x8x8xf32>
    %c0_9 = arith.constant 0 : index
    %c0_10 = arith.constant 0 : index
    %c0_11 = arith.constant 0 : index
    %9 = vector.load %arg8[%c0_9, %c0_10, %c0_11] : memref<4x8x1xf32, #tpu.memory_space<vmem>>, vector<4x8x1xf32>
    %cst_12 = arith.constant dense<0xFF800000> : vector<4x8xf32>
    %10 = vector.multi_reduction <maximumf>, %8, %cst_12 [2] : vector<4x8x8xf32> to vector<4x8xf32>
    %11 = vector.shape_cast %10 : vector<4x8xf32> to vector<4x8x1xf32>
    %12 = arith.maximumf %9, %11 : vector<4x8x1xf32>
    %13 = arith.subf %9, %12 : vector<4x8x1xf32>
    %14 = math.exp %13 : vector<4x8x1xf32>
    %15 = vector.broadcast %12 : vector<4x8x1xf32> to vector<4x8x8xf32>
    %16 = arith.subf %8, %15 : vector<4x8x8xf32>
    %17 = math.exp %16 : vector<4x8x8xf32>
    %c0_13 = arith.constant 0 : index
    %c0_14 = arith.constant 0 : index
    %c0_15 = arith.constant 0 : index
    %18 = vector.load %arg9[%c0_13, %c0_14, %c0_15] : memref<4x8x1xf32, #tpu.memory_space<vmem>>, vector<4x8x1xf32>
    %19 = arith.mulf %14, %18 : vector<4x8x1xf32>
    %cst_16 = arith.constant dense<0.000000e+00> : vector<4x8xf32>
    %20 = vector.multi_reduction <add>, %17, %cst_16 [2] : vector<4x8x8xf32> to vector<4x8xf32>
    %21 = vector.shape_cast %20 : vector<4x8xf32> to vector<4x8x1xf32>
    %22 = arith.addf %19, %21 : vector<4x8x1xf32>
    %c0_17 = arith.constant 0 : index
    %c0_18 = arith.constant 0 : index
    %c0_19 = arith.constant 0 : index
    %23 = vector.load %arg9[%c0_17, %c0_18, %c0_19] : memref<4x8x1xf32, #tpu.memory_space<vmem>>, vector<4x8x1xf32>
    tpu.vector_store %arg9[%c0_17, %c0_18, %c0_19], %22 {strides = array<i32>} : memref<4x8x1xf32, #tpu.memory_space<vmem>>, vector<4x8x1xf32>,
    %c0_20 = arith.constant 0 : index
    %c0_21 = arith.constant 0 : index
    %c0_22 = arith.constant 0 : index
    %24 = vector.load %arg10[%c0_20, %c0_21, %c0_22] : memref<4x8x8xf32, #tpu.memory_space<vmem>>, vector<4x8x8xf32>
    %25 = vector.broadcast %14 : vector<4x8x1xf32> to vector<4x8x8xf32>
    %26 = arith.mulf %25, %24 : vector<4x8x8xf32>
    %27 = arith.truncf %17 : vector<4x8x8xf32> to vector<4x8x8xbf16>
    %c0_23 = arith.constant 0 : index
    %c0_24 = arith.constant 0 : index
    %c0_25 = arith.constant 0 : index
    %28 = vector.load %arg4[%c0_23, %c0_24, %c0_25] : memref<4x8x8xbf16, #tpu.memory_space<vmem>>, vector<4x8x8xbf16>
    "tpu.trace_start"() <{level = 10 : i32, message = "hts,hsd->htd"}> : () -> ()
    %cst_26 = arith.constant dense<0.000000e+00> : vector<4x8x8xf32>
    %29 = tpu.matmul %27, %28, %cst_26 {dimension_numbers = #tpu.dot_dimension_numbers<[2], [1], [1], [2], [0, 0, 0, 1, 1, 2], [0], [0]>} : vector<4x8x8xbf16>, vector<4x8x8xbf16>, vector<4x8x8xf32> -> vector<4x8x8xf32>
    "tpu.trace_stop"() : () -> ()
    %30 = arith.addf %26, %29 : vector<4x8x8xf32>
    %c0_27 = arith.constant 0 : index
    %c0_28 = arith.constant 0 : index
    %c0_29 = arith.constant 0 : index
    %31 = vector.load %arg10[%c0_27, %c0_28, %c0_29] : memref<4x8x8xf32, #tpu.memory_space<vmem>>, vector<4x8x8xf32>
    tpu.vector_store %arg10[%c0_27, %c0_28, %c0_29], %30 {strides = array<i32>} : memref<4x8x8xf32, #tpu.memory_space<vmem>>, vector<4x8x8xf32>,
    %c0_30 = arith.constant 0 : index
    %c0_31 = arith.constant 0 : index
    %c0_32 = arith.constant 0 : index
    %32 = vector.load %arg8[%c0_30, %c0_31, %c0_32] : memref<4x8x1xf32, #tpu.memory_space<vmem>>, vector<4x8x1xf32>
    tpu.vector_store %arg8[%c0_30, %c0_31, %c0_32], %12 {strides = array<i32>} : memref<4x8x1xf32, #tpu.memory_space<vmem>>, vector<4x8x1xf32>,
    %c0_i32_33 = arith.constant 0 : i32
    %33 = arith.cmpi eq, %arg1, %c0_i32_33 : i32
    %34 = arith.extui %33 : i1 to i32
    %c0_i32_34 = arith.constant 0 : i32
    %35 = arith.cmpi ne, %34, %c0_i32_34 : i32
    scf.if %35 {
      %c0_35 = arith.constant 0 : index
      %c0_36 = arith.constant 0 : index
      %c0_37 = arith.constant 0 : index
      %36 = vector.load %arg9[%c0_35, %c0_36, %c0_37] : memref<4x8x1xf32, #tpu.memory_space<vmem>>, vector<4x8x1xf32>
      %cst_38 = arith.constant 1.000000e-30 : f32
      %37 = vector.broadcast %cst_38 : f32 to vector<4x8x1xf32>
      %38 = arith.maximumf %36, %37 : vector<4x8x1xf32>
      %c0_39 = arith.constant 0 : index
      %c0_40 = arith.constant 0 : index
      %c0_41 = arith.constant 0 : index
      %39 = vector.load %arg10[%c0_39, %c0_40, %c0_41] : memref<4x8x8xf32, #tpu.memory_space<vmem>>, vector<4x8x8xf32>
      %40 = tpu.reciprocal %38 {approx = true} : vector<4x8x1xf32> -> vector<4x8x1xf32>
      %41 = vector.broadcast %40 : vector<4x8x1xf32> to vector<4x8x8xf32>
      %42 = arith.mulf %39, %41 : vector<4x8x8xf32>
      %43 = arith.truncf %42 : vector<4x8x8xf32> to vector<4x8x8xbf16>
      %c0_42 = arith.constant 0 : index
      %c0_43 = arith.constant 0 : index
      %c0_44 = arith.constant 0 : index
      %44 = vector.load %arg5[%c0_42, %c0_43, %c0_44] : memref<4x8x32xbf16, #tpu.memory_space<vmem>>, vector<4x8x32xbf16>
      "tpu.trace_start"() <{level = 10 : i32, message = "htd,hde->hte"}> : () -> ()
      %cst_45 = arith.constant dense<0.000000e+00> : vector<4x8x32xf32>
      %45 = tpu.matmul %43, %44, %cst_45 {dimension_numbers = #tpu.dot_dimension_numbers<[2], [1], [1], [2], [0, 0, 0, 1, 1, 2], [0], [0]>} : vector<4x8x8xbf16>, vector<4x8x32xbf16>, vector<4x8x32xf32> -> vector<4x8x32xf32>
      "tpu.trace_stop"() : () -> ()
      %cst_46 = arith.constant dense<0.000000e+00> : vector<8x32xf32>
      %46 = vector.multi_reduction <add>, %45, %cst_46 [0] : vector<4x8x32xf32> to vector<8x32xf32>
      %c0_47 = arith.constant 0 : index
      %c0_48 = arith.constant 0 : index
      %47 = vector.load %arg7[%c0_47, %c0_48] : memref<8x32xf32, #tpu.memory_space<vmem>>, vector<8x32xf32>
      tpu.vector_store %arg7[%c0_47, %c0_48], %46 {strides = array<i32>} : memref<8x32xf32, #tpu.memory_space<vmem>>, vector<8x32xf32>,
    } else {
    }
    return
  }
  func.func @transform_0(%arg0: i32, %arg1: i32) -> (i32, i32, i32) {
    %c0_i32 = arith.constant 0 : i32
    %c0_i32_0 = arith.constant 0 : i32
    %c0_i32_1 = arith.constant 0 : i32
    return %c0_i32, %arg0, %c0_i32_0 : i32, i32, i32
  }
  func.func @transform_1(%arg0: i32, %arg1: i32) -> (i32, i32, i32) {
    %c0_i32 = arith.constant 0 : i32
    %c0_i32_0 = arith.constant 0 : i32
    %c0_i32_1 = arith.constant 0 : i32
    return %c0_i32, %arg1, %c0_i32_0 : i32, i32, i32
  }
  func.func @transform_2(%arg0: i32, %arg1: i32) -> (i32, i32, i32) {
    %c0_i32 = arith.constant 0 : i32
    %c0_i32_0 = arith.constant 0 : i32
    %c0_i32_1 = arith.constant 0 : i32
    return %c0_i32, %arg1, %c0_i32_0 : i32, i32, i32
  }
  func.func @transform_3(%arg0: i32, %arg1: i32) -> (i32, i32, i32) {
    %c0_i32 = arith.constant 0 : i32
    %c0_i32_0 = arith.constant 0 : i32
    %c0_i32_1 = arith.constant 0 : i32
    %c0_i32_2 = arith.constant 0 : i32
    return %c0_i32, %c0_i32_0, %c0_i32_1 : i32, i32, i32
  }
  func.func @transform_4(%arg0: i32, %arg1: i32) -> (i32, i32, i32) {
    %c0_i32 = arith.constant 0 : i32
    %c0_i32_0 = arith.constant 0 : i32
    return %c0_i32, %arg0, %arg1 : i32, i32, i32
  }
  func.func @transform_5(%arg0: i32, %arg1: i32) -> (i32, i32) {
    %c0_i32 = arith.constant 0 : i32
    %c0_i32_0 = arith.constant 0 : i32
    return %arg0, %c0_i32 : i32, i32
  }
}

</mosaic_0001>

<bundles_post_ra>
// kernel: tpu_custom_call.1
= control target key start
LH: loop header
LB: loop body
LE: loop exit
PB: predicated region body
PF: predicated region fallthrough
CT: control target
= control target key end

     0   :  { %10 = vsyncpa [#allocation6], 0  ;;  %s1495_s0 = inlined_call_operand.hbm [shape: bf16[4,8,8], index: 0, kind: input, shape index: {}]   ;;  %s1496_s1 = inlined_call_operand.hbm [shape: bf16[4,8,8], index: 1, kind: input, shape index: {}]   ;;  %s1497_s2 = inlined_call_operand.hbm [shape: bf16[4,8,8], index: 2, kind: input, shape index: {}]   ;;  %s1498_s3 = inlined_call_operand.hbm [shape: bf16[4,8,32], index: 3, kind: input, shape index: {}]   ;;  %s1499_s4 = inlined_call_operand.hbm [shape: bf16[4,8,8], index: 4, kind: input, shape index: {}]   ;;  %s1500_s5 = inlined_call_operand.hbm [shape: f32[8,32], index: 5, kind: output, shape index: {}]  }
   0x1   :  { %11 = vsyncpa [#allocation9], 0 }
   0x2   :  { %12 = vsyncpa [#allocation12], 0 }
   0x3   :  { %13 = vsyncpa [#allocation7], 0  ;;  %s1191_s18 = smov [#allocation8]   ;;  %s1192_s20 = smov [#allocation11]  }
   0x4   :  { %s31_s19 = sshll.u32 %s1191_s18, 4  ;;  %s55_s21 = sshll.u32 %s1192_s20, 4  ;;  %s32_s19 = int_to_ptr.vmem [resolvable:$true] %s31_s19  ;;  %s1233_s21 = int_to_ptr.vmem [resolvable:$true] %s55_s21 }
   0x5   :  { %s1051_s24 = scalar_lea.hbm %s1496_s1, 256 }
   0x6   :  { %p1052_p0 = scmp.ne.s32.totalorder %s1496_s1, %s1051_s24  ;;  %p1055_p1 = scmp.lt.u32.totalorder %s1051_s24, %s1496_s1 }
   0x8   :  { %p1057_p2 = pnand %p1055_p1, %p1052_p0 }
   0xa   :  { %1060 = shalt.err (!%p1057_p2)
}
   0xb   :  { %s1061_s29 = scalar_lea.vmem %s32_s19, 256  ;;  %p1066_p4 = scmp.lt.s32.totalorder %s32_s19, %s32_s19 }
   0xc   :  { %p1062_p3 = scmp.ne.s32.totalorder %s32_s19, %s1061_s29  ;;  %p1067_p5 = scmp.lt.s32.totalorder %s1061_s29, %s1061_s29 }
   0xe   :  { %p1068_p6 = por %p1067_p5, %p1066_p4 }
  0x10   :  { %p1069_p7 = pnand %p1068_p6, %p1062_p3 }
  0x12   :  { %1072 = shalt.err (!%p1069_p7)
}
  0x13   :  { %s1193_s30 = smov 64   ;;  %s1194_s6 = smov 4  }
  0x14   :  { %37 = dma.hbm_to_vmem [thread:$0]  %s1496_s1, 256, %s32_s19, [#allocation9], %s1193_s30, %s1193_s30, %s1194_s6  }
  0x15   :  { %s1073_s11 = scalar_lea.hbm %s1498_s3, 256 }
  0x16   :  { %p1074_p8 = scmp.ne.s32.totalorder %s1498_s3, %s1073_s11  ;;  %p1077_p9 = scmp.lt.u32.totalorder %s1073_s11, %s1498_s3 }
  0x18   :  { %p1079_p10 = pnand %p1077_p9, %p1074_p8 }
  0x1a   :  { %1082 = shalt.err (!%p1079_p10)
}
  0x1b   :  { %s1083_s16 = scalar_lea.vmem %s1233_s21, 256  ;;  %p1088_p12 = scmp.lt.s32.totalorder %s1233_s21, %s1233_s21 }
  0x1c   :  { %p1084_p11 = scmp.ne.s32.totalorder %s1233_s21, %s1083_s16  ;;  %p1089_p13 = scmp.lt.s32.totalorder %s1083_s16, %s1083_s16 }
  0x1e   :  { %p1090_p0 = por %p1089_p13, %p1088_p12 }
  0x20   :  { %p1091_p1 = pnand %p1090_p0, %p1084_p11 }
  0x22   :  { %1094 = shalt.err (!%p1091_p1)
}
  0x23   :  { %61 = dma.hbm_to_vmem [thread:$0]  %s1498_s3, 256, %s1233_s21, [#allocation12], %s1193_s30, %s1193_s30, %s1194_s6  }
  0x24   :  { %s1195_s18 = smov [#allocation5]   ;;  %s1196_s20 = smov [#allocation10]  }
  0x25   :  { %s19_s19 = sshll.u32 %s1195_s18, 4  ;;  %s43_s22 = sshll.u32 %s1196_s20, 4  ;;  %s20_s19 = int_to_ptr.vmem [resolvable:$true] %s19_s19  ;;  %s1270_s22 = int_to_ptr.vmem [resolvable:$true] %s43_s22 }
  0x26   :  { %s1095_s25 = scalar_lea.hbm %s1495_s0, 256 }
  0x27   :  { %p1096_p2 = scmp.ne.s32.totalorder %s1495_s0, %s1095_s25  ;;  %p1099_p3 = scmp.lt.u32.totalorder %s1095_s25, %s1495_s0 }
  0x29   :  { %p1101_p4 = pnand %p1099_p3, %p1096_p2 }
  0x2b   :  { %1104 = shalt.err (!%p1101_p4)
}
  0x2c   :  { %s1105_s3 = scalar_lea.vmem %s20_s19, 256  ;;  %p1110_p6 = scmp.lt.s32.totalorder %s20_s19, %s20_s19 }
  0x2d   :  { %p1106_p5 = scmp.ne.s32.totalorder %s20_s19, %s1105_s3  ;;  %p1111_p7 = scmp.lt.s32.totalorder %s1105_s3, %s1105_s3 }
  0x2f   :  { %p1112_p8 = por %p1111_p7, %p1110_p6 }
  0x31   :  { %p1113_p9 = pnand %p1112_p8, %p1106_p5 }
  0x33   :  { %1116 = shalt.err (!%p1113_p9)
}
  0x34   :  { %25 = dma.hbm_to_vmem [thread:$0]  %s1495_s0, 256, %s20_s19, [#allocation6], %s1193_s30, %s1193_s30, %s1194_s6  }
  0x35   :  { %s1117_s10 = scalar_lea.hbm %s1497_s2, 256 }
  0x36   :  { %p1118_p10 = scmp.ne.s32.totalorder %s1497_s2, %s1117_s10  ;;  %p1121_p11 = scmp.lt.u32.totalorder %s1117_s10, %s1497_s2 }
  0x38   :  { %p1123_p12 = pnand %p1121_p11, %p1118_p10 }
  0x3a   :  { %1126 = shalt.err (!%p1123_p12)
}
  0x3b   :  { %s1127_s15 = scalar_lea.vmem %s1270_s22, 256  ;;  %p1132_p0 = scmp.lt.s32.totalorder %s1270_s22, %s1270_s22 }
  0x3c   :  { %p1128_p13 = scmp.ne.s32.totalorder %s1270_s22, %s1127_s15  ;;  %p1133_p1 = scmp.lt.s32.totalorder %s1127_s15, %s1127_s15 }
  0x3e   :  { %p1134_p2 = por %p1133_p1, %p1132_p0 }
  0x40   :  { %p1135_p3 = pnand %p1134_p2, %p1128_p13 }
  0x42   :  { %1138 = shalt.err (!%p1135_p3)
}
  0x43   :  { %49 = dma.hbm_to_vmem [thread:$0]  %s1497_s2, 256, %s1270_s22, [#allocation9], %s1193_s30, %s1193_s30, %s1194_s6  }
  0x44   :  { %s1197_s1 = smov [#allocation13]   ;;  %s1139_s20 = scalar_lea.hbm %s1499_s4, 256 }
  0x45   :  { %s67_s17 = sshll.u32 %s1197_s1, 4  ;;  %p1140_p4 = scmp.ne.s32.totalorder %s1499_s4, %s1139_s20  ;;  %s68_s17 = int_to_ptr.vmem [resolvable:$true] %s67_s17 }
  0x46   :  { %p1143_p5 = scmp.lt.u32.totalorder %s1139_s20, %s1499_s4 }
  0x48   :  { %p1145_p6 = pnand %p1143_p5, %p1140_p4 }
  0x4a   :  { %1148 = shalt.err (!%p1145_p6)
}
  0x4b   :  { %s1149_s27 = scalar_lea.vmem %s68_s17, 256  ;;  %p1154_p8 = scmp.lt.s32.totalorder %s68_s17, %s68_s17 }
  0x4c   :  { %p1150_p7 = scmp.ne.s32.totalorder %s68_s17, %s1149_s27  ;;  %p1155_p9 = scmp.lt.s32.totalorder %s1149_s27, %s1149_s27 }
  0x4e   :  { %p1156_p10 = por %p1155_p9, %p1154_p8 }
  0x50   :  { %p1157_p11 = pnand %p1156_p10, %p1150_p7 }
  0x52   :  { %1160 = shalt.err (!%p1157_p11)
}
  0x53   :  { %73 = dma.hbm_to_vmem [thread:$0]  %s1499_s4, 256, %s68_s17, [#allocation12], %s1193_s30, %s1193_s30, %s1194_s6  }
  0x54   :  { %1183 = dma.done.wait [#allocation6], 256  }
  0x55   :  { %1184 = vsyncadd [#allocation6], 4294967040 }
  0x56   :  { %1185 = dma.done.wait [#allocation9], 512  }
  0x57   :  { %1186 = vsyncadd [#allocation9], 4294966784 }
  0x58   :  { %1187 = dma.done.wait [#allocation12], 512  }
  0x59   :  { %1188 = vsyncadd [#allocation12], 4294966784  ;;  %vm103_vm0 = vcmask 64512   ;;  %v1198_v0 = vmov 0.0   ;;  %vm1199_vm1 = vmmov 0   ;;  %vm94_vm2 = vcmask 7168  }
  0x5a   :  { %941 = vmatprep.subr.bf16.mxu0 %v1198_v0  ;;  %104 = vst.msk [vmem:[#allocation4] sm:$0xff] %vm103_vm0, %v1198_v0  ;;  %105 = vst.msk [vmem:[#allocation4 + $0x8] sm:$0xff] %vm103_vm0, %v1198_v0  ;;  %947 = vmatprep.subr.bf16.mxu1 %v1198_v0  ;;  %v112_v1 = vld [vmem:[#allocation8] sm:$0xf]  ;;  %v113_v2 = vld [vmem:[#allocation8 + $0x4] sm:$0xf] }
  0x5b   :  { %106 = vst.msk [vmem:[#allocation4 + $0x10] sm:$0xff] %vm103_vm0, %v1198_v0  ;;  %107 = vst.msk [vmem:[#allocation4 + $0x18] sm:$0xff] %vm103_vm0, %v1198_v0  ;;  %943 = vmatprep.mubr.msk.bf16.mxu0 %vm1199_vm1, %v1198_v0  ;;  %949 = vmatprep.mubr.msk.bf16.mxu1 %vm1199_vm1, %v1198_v0  ;;  %v129_v3 = vsel %vm103_vm0, %v112_v1, 0  ;;  %v175_v4 = vsel %vm103_vm0, %v113_v2, 0  ;;  %v114_v5 = vld [vmem:[#allocation8 + $0x8] sm:$0xf] }
  0x5c   :  { %942 = vmatpush3.bf16.xpose.msra.mxu0 %v129_v3  ;;  %948 = vmatpush3.bf16.xpose.msra.mxu1 %v175_v4  ;;  %v115_v6 = vld [vmem:[#allocation8 + $0xc] sm:$0xf]  ;;  %v108_v7 = vld [vmem:[#allocation5] sm:$0xf]  ;;  %v109_v8 = vld [vmem:[#allocation5 + $0x4] sm:$0xf] }
  0x5d   :  { %953 = vmatprep.subr.bf16.mxu0 %v1198_v0  ;;  %959 = vmatprep.subr.bf16.mxu1 %v1198_v0  ;;  %v221_v9 = vsel %vm103_vm0, %v114_v5, 0  ;;  %v267_v10 = vsel %vm103_vm0, %v115_v6, 0  ;;  %v110_v11 = vld [vmem:[#allocation5 + $0x8] sm:$0xf]  ;;  %v111_v12 = vld [vmem:[#allocation5 + $0xc] sm:$0xf] }
  0x5e   :  { %v1200_v13 = vmov -1e+30   ;;  %99 = vst.msk [vmem:[#allocation3] sm:$0xff] %vm94_vm2, %v1198_v0  ;;  %100 = vst.msk [vmem:[#allocation3 + $0x8] sm:$0xff] %vm94_vm2, %v1198_v0  ;;  %v909_v14 = vld [vmem:[#allocation13] sm:$0xff]   ;;  %v916_v25 = vld [vmem:[#allocation13 + $0x8] sm:$0xff]  }
  0x5f   :  { %95 = vst.msk [vmem:[#allocation2] sm:$0xff] %vm94_vm2, %v1200_v13  ;;  %96 = vst.msk [vmem:[#allocation2 + $0x8] sm:$0xff] %vm94_vm2, %v1200_v13  ;;  %v910_v15 = vunpack.c.l.bf16 %v909_v14  ;;  %v911_v16 = vunpack.c.h.bf16 %v909_v14  ;;  %v914_v30 = vunpack.c.l.bf16 %v916_v25  ;;  %v915_v31 = vunpack.c.h.bf16 %v916_v25  ;;  %v434_v61 = vld [vmem:[#allocation10] sm:$0xf]  ;;  %v435_v63 = vld [vmem:[#allocation10 + $0x4] sm:$0xf] }
  0x60   :  { %97 = vst.msk [vmem:[#allocation2 + $0x10] sm:$0xff] %vm94_vm2, %v1200_v13  ;;  %98 = vst.msk [vmem:[#allocation2 + $0x18] sm:$0xff] %vm94_vm2, %v1200_v13  ;;  %v1201_v44 = vmov 0   ;;  %vm441_vm3 = vcmask 1043456   ;;  %v436_v13 = vld [vmem:[#allocation10 + $0x8] sm:$0xf] }
  0x61   :  { %101 = vst.msk [vmem:[#allocation3 + $0x10] sm:$0xff] %vm94_vm2, %v1198_v0  ;;  %102 = vst.msk [vmem:[#allocation3 + $0x18] sm:$0xff] %vm94_vm2, %v1198_v0  ;;  %1025 = vset.pattern.permute.xlu0 %v1201_v44  ;;  %1026 = vset.pattern.permute.xlu1 %v1201_v44  ;;  %v443_v62 = vsel %vm441_vm3, %v434_v61, 0  ;;  %v489_v1 = vsel %vm441_vm3, %v435_v63, 0  ;;  %vm870_vm4 = vcmask 261120   ;;  %s1202_s4 = smov [#allocation14]  }
  0x62   :  { %s885_s30 = sshll.u32 %s1202_s4, 4  ;;  %s886_s30 = int_to_ptr.vmem [resolvable:$true] %s885_s30 }
  0x63   :  { %944 = vmatmul.mubr.msk.bf16.vlgmr.msra.gmra.mrb[0].mxu0 %vm103_vm0, %v108_v7  ;;  %950 = vmatmul.mubr.msk.bf16.vlgmr.msra.gmra.mrb[0].mxu1 %vm103_vm0, %v109_v8  ;;  %s1161_s6 = scalar_lea.vmem %s886_s30, 128  ;;  %p1166_p13 = scmp.lt.s32.totalorder %s886_s30, %s886_s30 }
  0x64   :  { %954 = vmatpush3.bf16.xpose.msra.mxu0 %v221_v9  ;;  %960 = vmatpush3.bf16.xpose.msra.mxu1 %v267_v10  ;;  %p1162_p12 = scmp.ne.s32.totalorder %s886_s30, %s1161_s6  ;;  %p1167_p0 = scmp.lt.s32.totalorder %s1161_s6, %s1161_s6 }
  0x65   :  { %955 = vmatprep.mubr.msk.bf16.mxu0 %vm1199_vm1, %v1198_v0  ;;  %961 = vmatprep.mubr.msk.bf16.mxu1 %vm1199_vm1, %v1198_v0 }
  0x66   :  { %965 = vmatprep.subr.bf16.mxu0 %v1198_v0  ;;  %971 = vmatprep.subr.bf16.mxu1 %v1198_v0  ;;  %v1378_v45 = vld [vmem:[#allocation2] sm:$0xff]  ;;  %v1383_v48 = vld [vmem:[#allocation2 + $0x8] sm:$0xff]  ;;  %p1168_p1 = por %p1167_p0, %p1166_p13 }
  0x67   :  { %v1393_v52 = vld [vmem:[#allocation2 + $0x10] sm:$0xff]  ;;  %v1403_v56 = vld [vmem:[#allocation2 + $0x18] sm:$0xff] }
  0x68   :  { %p1169_p2 = pnand %p1168_p1, %p1162_p12 }
  0x6b   :  { %956 = vmatmul.mubr.msk.bf16.vlgmr.msra.gmra.mrb[4].mxu0 %vm103_vm0, %v110_v11  ;;  %962 = vmatmul.mubr.msk.bf16.vlgmr.msra.gmra.mrb[4].mxu1 %vm103_vm0, %v111_v12 }
  0x6c   :  { %967 = vmatprep.mubr.msk.bf16.mxu0 %vm1199_vm1, %v1198_v0  ;;  %973 = vmatprep.mubr.msk.bf16.mxu1 %vm1199_vm1, %v1198_v0 }
  0x6d   :  { %966 = vmatpush3.bf16.msra.mxu0 %v443_v62  ;;  %972 = vmatpush3.bf16.msra.mxu1 %v489_v1 }
  0x6e   :  { %977 = vmatprep.subr.bf16.mxu0 %v1198_v0  ;;  %983 = vmatprep.subr.bf16.mxu1 %v1198_v0 }
 0x136   :  { %v165_v17 = vpop.f32.mrb[0].mxu0  ;;  %v211_v18 = vpop.f32.mrb[0].mxu1 }
 0x137   :  { %v1368_v19 = vadd.f32 %v910_v15, %v165_v17  ;;  %v945_v20 = vpop.f32.mrb[1].mxu0  ;;  %v1370_v21 = vadd.f32 %v911_v16, %v211_v18  ;;  %v951_v22 = vpop.f32.mrb[1].mxu1  ;;  %v535_v18 = vsel %vm441_vm3, %v436_v13, 0 }
 0x138   :  { %v168_v23 = vpop.f32.mrb[2].mxu0  ;;  %v214_v24 = vpop.f32.mrb[2].mxu1 }
 0x139   :  { %v946_v26 = vpop.f32.mrb[3].mxu0  ;;  %v313_v27 = vsel %vm103_vm0, %v1368_v19, -inf  ;;  %v952_v28 = vpop.f32.mrb[3].mxu1  ;;  %v316_v29 = vsel %vm103_vm0, %v1370_v21, -inf }
 0x13a   :  { %314 = vmax.xlane.f32.xlu0 %v313_v27 }
 0x13e   :  { %317 = vmax.xlane.f32.xlu0 %v316_v29  ;;  %v257_v32 = vpop.f32.mrb[4].mxu0  ;;  %v303_v33 = vpop.f32.mrb[4].mxu1 }
 0x13f   :  { %v258_v34 = vadd.f32 %v914_v30, %v257_v32  ;;  %v957_v35 = vpop.f32.mrb[5].mxu0  ;;  %v304_v36 = vadd.f32 %v915_v31, %v303_v33  ;;  %v963_v37 = vpop.f32.mrb[5].mxu1 }
 0x140   :  { %v260_v38 = vpop.f32.mrb[6].mxu0  ;;  %v306_v39 = vpop.f32.mrb[6].mxu1 }
 0x141   :  { %v958_v40 = vpop.f32.mrb[7].mxu0  ;;  %v319_v41 = vsel %vm103_vm0, %v258_v34, -inf  ;;  %v964_v42 = vpop.f32.mrb[7].mxu1  ;;  %v322_v43 = vsel %vm103_vm0, %v304_v36, -inf  ;;  %v682_v38 = vld [vmem:[#allocation11] sm:$0xf] }
 0x142   :  { %320 = vmax.xlane.f32.xlu1 %v319_v41  ;;  %v690_v39 = vsel %vm441_vm3, %v682_v38, 0  ;;  %v373_v40 = vld [vmem:[#allocation3] sm:$0xff] }
 0x146   :  { %323 = vmax.xlane.f32.xlu1 %v322_v43  ;;  %v374_v43 = vld [vmem:[#allocation3 + $0x8] sm:$0xff] }
 0x1c7   :  { %v315_v46 = vpop.xlane.xlu0 %314 }
 0x1c8   :  { %v1381_v47 = vmax.f32 %v1378_v45, %v315_v46 }
 0x1ca   :  { %v329_v49 = vsub.f32 %v1378_v45, %v1381_v47  ;;  %631 = vst.msk [vmem:[#allocation2] sm:$0xff] %vm94_vm2, %v1381_v47  ;;  %343 = vperm.xlu0 %1025, %v1381_v47   ;;  %v375_v47 = vld [vmem:[#allocation3 + $0x10] sm:$0xff] }
 0x1cb   :  { %v318_v50 = vpop.xlane.xlu0 %317 }
 0x1cc   :  { %v1391_v51 = vmax.f32 %v1383_v48, %v318_v50  ;;  %v333_v31 = vmul.f32 1.442695, %v329_v49 }
 0x1ce   :  { %v330_v53 = vsub.f32 %v1383_v48, %v1391_v51  ;;  %632 = vst.msk [vmem:[#allocation2 + $0x8] sm:$0xff] %vm94_vm2, %v1391_v51  ;;  %348 = vperm.xlu1 %1026, %v1391_v51   ;;  %v376_v51 = vld [vmem:[#allocation3 + $0x18] sm:$0xff] }
 0x1cf   :  { %v321_v54 = vpop.xlane.xlu1 %320 }
 0x1d0   :  { %v1401_v55 = vmax.f32 %v1393_v52, %v321_v54  ;;  %v335_v28 = vmul.f32 1.442695, %v330_v53 }
 0x1d2   :  { %v331_v57 = vsub.f32 %v1393_v52, %v1401_v55  ;;  %633 = vst.msk [vmem:[#allocation2 + $0x10] sm:$0xff] %vm94_vm2, %v1401_v55  ;;  %353 = vperm.xlu1 %1026, %v1401_v55  }
 0x1d3   :  { %v324_v58 = vpop.xlane.xlu1 %323 }
 0x1d4   :  { %v1411_v59 = vmax.f32 %v1403_v56, %v324_v58  ;;  %v337_v32 = vmul.f32 1.442695, %v331_v57 }
 0x1d6   :  { %v332_v60 = vsub.f32 %v1403_v56, %v1411_v59  ;;  %634 = vst.msk [vmem:[#allocation2 + $0x18] sm:$0xff] %vm94_vm2, %v1411_v59  ;;  %358 = vperm.xlu1 %1026, %v1411_v59  }
 0x1d8   :  { %v339_v33 = vmul.f32 1.442695, %v332_v60 }
 0x249   :  { %v344_v2 = vpop.permute.xlu0 %343 }
 0x24a   :  { %v361_v3 = vsub.f32 %v1368_v19, %v344_v2  ;;  %v437_v19 = vld [vmem:[#allocation10 + $0xc] sm:$0xf]  ;;  %v683_v2 = vld [vmem:[#allocation11 + $0x4] sm:$0xf] }
 0x24b   :  { %v581_v23 = vsel %vm441_vm3, %v437_v19, 0  ;;  %v404_v19 = vld [vmem:[#allocation4 + $0x10] sm:$0xff] }
 0x24c   :  { %v365_v4 = vmul.f32 1.442695, %v361_v3 }
 0x24d   :  { %v349_v5 = vpop.permute.xlu1 %348 }
 0x24e   :  { %1027 = vpow2.f32 %v365_v4  ;;  %v362_v6 = vsub.f32 %v1370_v21, %v349_v5  ;;  %v736_v4 = vsel %vm441_vm3, %v683_v2, 0 }
 0x250   :  { %v367_v7 = vmul.f32 1.442695, %v362_v6 }
 0x251   :  { %v354_v8 = vpop.permute.xlu1 %353 }
 0x252   :  { %1029 = vpow2.f32 %v367_v7  ;;  %v363_v9 = vsub.f32 %v258_v34, %v354_v8  ;;  %v402_v7 = vld [vmem:[#allocation4] sm:$0xff] }
 0x254   :  { %v369_v10 = vmul.f32 1.442695, %v363_v9 }
 0x255   :  { %v359_v11 = vpop.permute.xlu1 %358 }
 0x256   :  { %1031 = vpow2.f32 %v369_v10  ;;  %v364_v12 = vsub.f32 %v304_v36, %v359_v11  ;;  %v403_v10 = vld [vmem:[#allocation4 + $0x8] sm:$0xff] }
 0x258   :  { %v1028_v14 = vpop.eup %1027  ;;  %v371_v15 = vmul.f32 1.442695, %v364_v12 }
 0x259   :  { %v381_v16 = vsel %vm103_vm0, %v1028_v14, 0.0  ;;  %v430_v17 = vpack.c.bf16 %v1028_v14, %v1028_v14 }
 0x25a   :  { %1033 = vpow2.f32 %v371_v15  ;;  %382 = vadd.xlane.f32.xlu1 %v381_v16 }
 0x25b   :  { %968 = vmatmul.mubr.msk.bf16.vlgmr.msra.gmra.mrb[8].mxu0 %vm103_vm0, %v430_v17  ;;  %1035 = vpow2.f32 %v335_v28 }
 0x25c   :  { %v1030_v20 = vpop.eup %1029  ;;  %978 = vmatpush3.bf16.msra.mxu0 %v535_v18  ;;  %979 = vmatprep.mubr.msk.bf16.mxu0 %vm1199_vm1, %v1198_v0  ;;  %1037 = vpow2.f32 %v333_v31 }
 0x25d   :  { %v384_v21 = vsel %vm103_vm0, %v1030_v20, 0.0  ;;  %v431_v22 = vpack.c.bf16 %v1030_v20, %v1030_v20  ;;  %989 = vmatprep.subr.bf16.mxu0 %v1198_v0  ;;  %1039 = vpow2.f32 %v337_v32 }
 0x25e   :  { %385 = vadd.xlane.f32.xlu0 %v384_v21  ;;  %1041 = vpow2.f32 %v339_v33 }
 0x25f   :  { %974 = vmatmul.mubr.msk.bf16.vlgmr.msra.gmra.mrb[8].mxu1 %vm103_vm0, %v431_v22 }
 0x260   :  { %v1032_v24 = vpop.eup %1031  ;;  %984 = vmatpush3.bf16.msra.mxu1 %v581_v23  ;;  %985 = vmatprep.mubr.msk.bf16.mxu1 %vm1199_vm1, %v1198_v0 }
 0x261   :  { %v387_v25 = vsel %vm103_vm0, %v1032_v24, 0.0  ;;  %v432_v26 = vpack.c.bf16 %v1032_v24, %v1032_v24  ;;  %995 = vmatprep.subr.bf16.mxu1 %v1198_v0 }
 0x262   :  { %388 = vadd.xlane.f32.xlu1 %v387_v25 }
 0x263   :  { %980 = vmatmul.mubr.msk.bf16.vlgmr.msra.gmra.mrb[12].mxu0 %vm103_vm0, %v432_v26  ;;  %v405_v26 = vld [vmem:[#allocation4 + $0x18] sm:$0xff] }
 0x264   :  { %v1034_v27 = vpop.eup %1033  ;;  %991 = vmatprep.mubr.msk.bf16.mxu0 %vm1199_vm1, %v1198_v0  ;;  %990 = vmatpush3.bf16.msra.mxu0 %v690_v39 }
 0x265   :  { %v390_v29 = vsel %vm103_vm0, %v1034_v27, 0.0  ;;  %v433_v30 = vpack.c.bf16 %v1034_v27, %v1034_v27  ;;  %v1036_v34 = vpop.eup %1035  ;;  %1001 = vmatprep.subr.bf16.mxu0 %v1198_v0 }
 0x266   :  { %391 = vadd.xlane.f32.xlu1 %v390_v29  ;;  %v1038_v35 = vpop.eup %1037  ;;  %v378_v45 = vmul.f32 %v1036_v34, %v374_v43 }
 0x267   :  { %986 = vmatmul.mubr.msk.bf16.vlgmr.msra.gmra.mrb[12].mxu1 %vm103_vm0, %v433_v30  ;;  %v1040_v36 = vpop.eup %1039  ;;  %v377_v41 = vmul.f32 %v1038_v35, %v373_v40 }
 0x268   :  { %997 = vmatprep.mubr.msk.bf16.mxu1 %vm1199_vm1, %v1198_v0  ;;  %v1042_v37 = vpop.eup %1041  ;;  %v379_v49 = vmul.f32 %v1040_v36, %v375_v47  ;;  %996 = vmatpush3.bf16.msra.mxu1 %v736_v4  ;;  %v685_v47 = vld [vmem:[#allocation11 + $0xc] sm:$0xf] }
 0x269   :  { %v380_v54 = vmul.f32 %v1042_v37, %v376_v51  ;;  %1007 = vmatprep.subr.bf16.mxu1 %v1198_v0 }
 0x274   :  { %413 = vperm.xlu0 %1025, %v1036_v34  }
 0x277   :  { %408 = vperm.xlu1 %1026, %v1038_v35  }
 0x27b   :  { %418 = vperm.xlu1 %1026, %v1040_v36  }
 0x27f   :  { %423 = vperm.xlu1 %1026, %v1042_v37  }
 0x2e7   :  { %v383_v42 = vpop.xlane.xlu1 %382 }
 0x2e8   :  { %v393_v44 = vadd.f32 %v383_v42, %v377_v41  ;;  %v684_v41 = vld [vmem:[#allocation11 + $0x8] sm:$0xf] }
 0x2ea   :  { %398 = vst.msk [vmem:[#allocation3] sm:$0xff] %vm94_vm2, %v393_v44  ;;  %v782_v44 = vsel %vm441_vm3, %v684_v41, 0 }
 0x2eb   :  { %v386_v46 = vpop.xlane.xlu0 %385 }
 0x2ec   :  { %v394_v48 = vadd.f32 %v386_v46, %v378_v45 }
 0x2ee   :  { %399 = vst.msk [vmem:[#allocation3 + $0x8] sm:$0xff] %vm94_vm2, %v394_v48 }
 0x2ef   :  { %v389_v50 = vpop.xlane.xlu1 %388 }
 0x2f0   :  { %v395_v52 = vadd.f32 %v389_v50, %v379_v49  ;;  %v828_v50 = vsel %vm441_vm3, %v685_v47, 0 }
 0x2f1   :  { %v638_v53 = vld [vmem:[#allocation3] sm:$0xff] }
 0x2f2   :  { %400 = vst.msk [vmem:[#allocation3 + $0x10] sm:$0xff] %vm94_vm2, %v395_v52  ;;  %v642_v55 = vmax.f32 %v638_v53, 1e-30 }
 0x2f3   :  { %v392_v56 = vpop.xlane.xlu1 %391  ;;  %v414_v11 = vpop.permute.xlu0 %413 }
 0x2f4   :  { %v396_v57 = vadd.f32 %v392_v56, %v380_v54  ;;  %1043 = vrcp.f32 %v642_v55  ;;  %v427_v17 = vmul.f32 %v414_v11, %v403_v10 }
 0x2f5   :  { %v639_v58 = vld [vmem:[#allocation3 + $0x8] sm:$0xff] }
 0x2f6   :  { %401 = vst.msk [vmem:[#allocation3 + $0x18] sm:$0xff] %vm94_vm2, %v396_v57  ;;  %v643_v59 = vmax.f32 %v639_v58, 1e-30 }
 0x2f7   :  { %v409_v8 = vpop.permute.xlu1 %408 }
 0x2f8   :  { %1045 = vrcp.f32 %v643_v59  ;;  %v426_v9 = vmul.f32 %v409_v8, %v402_v7 }
 0x2f9   :  { %v640_v60 = vld [vmem:[#allocation3 + $0x10] sm:$0xff] }
 0x2fa   :  { %v644_v61 = vmax.f32 %v640_v60, 1e-30 }
 0x2fb   :  { %v419_v15 = vpop.permute.xlu1 %418 }
 0x2fc   :  { %1047 = vrcp.f32 %v644_v61  ;;  %v428_v24 = vmul.f32 %v419_v15, %v404_v19 }
 0x2fd   :  { %v641_v62 = vld [vmem:[#allocation3 + $0x18] sm:$0xff] }
 0x2fe   :  { %v1044_v63 = vpop.eup %1043  ;;  %v645_v1 = vmax.f32 %v641_v62, 1e-30 }
 0x2ff   :  { %656 = vperm.xlu1 %1026, %v1044_v63   ;;  %v424_v27 = vpop.permute.xlu1 %423 }
 0x300   :  { %1049 = vrcp.f32 %v645_v1  ;;  %v429_v32 = vmul.f32 %v424_v27, %v405_v26 }
 0x302   :  { %v1046_v3 = vpop.eup %1045 }
 0x303   :  { %661 = vperm.xlu0 %1025, %v1046_v3  }
 0x306   :  { %v1048_v5 = vpop.eup %1047 }
 0x307   :  { %666 = vperm.xlu1 %1026, %v1048_v5  }
 0x30a   :  { %v1050_v6 = vpop.eup %1049 }
 0x30b   :  { %671 = vperm.xlu0 %1025, %v1050_v6  }
 0x32e   :  { %v479_v12 = vpop.f32.mrb[8].mxu0 }
 0x32f   :  { %v623_v13 = vadd.f32 %v479_v12, %v426_v9  ;;  %v969_v14 = vpop.f32.mrb[9].mxu0 }
 0x330   :  { %v482_v16 = vpop.f32.mrb[10].mxu0 }
 0x331   :  { %627 = vst.msk [vmem:[#allocation4] sm:$0xff] %vm103_vm0, %v623_v13  ;;  %v970_v18 = vpop.f32.mrb[11].mxu0 }
 0x332   :  { %v525_v20 = vpop.f32.mrb[8].mxu1 }
 0x333   :  { %v624_v21 = vadd.f32 %v525_v20, %v427_v17  ;;  %v975_v22 = vpop.f32.mrb[9].mxu1 }
 0x334   :  { %v528_v23 = vpop.f32.mrb[10].mxu1 }
 0x335   :  { %628 = vst.msk [vmem:[#allocation4 + $0x8] sm:$0xff] %vm103_vm0, %v624_v21  ;;  %v976_v25 = vpop.f32.mrb[11].mxu1 }
 0x336   :  { %v571_v28 = vpop.f32.mrb[12].mxu0 }
 0x337   :  { %v625_v29 = vadd.f32 %v571_v28, %v428_v24  ;;  %v981_v30 = vpop.f32.mrb[13].mxu0 }
 0x338   :  { %v574_v31 = vpop.f32.mrb[14].mxu0  ;;  %v646_v39 = vld [vmem:[#allocation4] sm:$0xff] }
 0x339   :  { %629 = vst.msk [vmem:[#allocation4 + $0x10] sm:$0xff] %vm103_vm0, %v625_v29  ;;  %v982_v33 = vpop.f32.mrb[15].mxu0 }
 0x33a   :  { %v617_v34 = vpop.f32.mrb[12].mxu1 }
 0x33b   :  { %v626_v35 = vadd.f32 %v617_v34, %v429_v32  ;;  %v987_v36 = vpop.f32.mrb[13].mxu1 }
 0x33c   :  { %v620_v37 = vpop.f32.mrb[14].mxu1  ;;  %v647_v45 = vld [vmem:[#allocation4 + $0x8] sm:$0xff] }
 0x33d   :  { %630 = vst.msk [vmem:[#allocation4 + $0x18] sm:$0xff] %vm103_vm0, %v626_v35  ;;  %v988_v38 = vpop.f32.mrb[15].mxu1 }
 0x340   :  { %v648_v51 = vld [vmem:[#allocation4 + $0x10] sm:$0xff] }
 0x344   :  { %v649_v56 = vld [vmem:[#allocation4 + $0x18] sm:$0xff] }
 0x37e   :  { %v657_v40 = vpop.permute.xlu1 %656 }
 0x37f   :  { %v674_v42 = vmul.f32 %v657_v40, %v646_v39 }
 0x381   :  { %v678_v43 = vpack.c.bf16 %v674_v42, %v674_v42 }
 0x382   :  { %v662_v46 = vpop.permute.xlu0 %661 }
 0x383   :  { %v675_v48 = vmul.f32 %v662_v46, %v647_v45  ;;  %992 = vmatmul.mubr.msk.bf16.vlgmr.msra.gmra.mrb[16].mxu0 %vm103_vm0, %v678_v43 }
 0x384   :  { %1002 = vmatpush3.bf16.msra.mxu0 %v782_v44  ;;  %1003 = vmatprep.mubr.msk.bf16.mxu0 %vm1199_vm1, %v1198_v0 }
 0x385   :  { %v679_v49 = vpack.c.bf16 %v675_v48, %v675_v48 }
 0x386   :  { %v667_v52 = vpop.permute.xlu1 %666 }
 0x387   :  { %v676_v53 = vmul.f32 %v667_v52, %v648_v51  ;;  %998 = vmatmul.mubr.msk.bf16.vlgmr.msra.gmra.mrb[16].mxu1 %vm103_vm0, %v679_v49 }
 0x388   :  { %1008 = vmatpush3.bf16.msra.mxu1 %v828_v50  ;;  %1009 = vmatprep.mubr.msk.bf16.mxu1 %vm1199_vm1, %v1198_v0 }
 0x389   :  { %v680_v54 = vpack.c.bf16 %v676_v53, %v676_v53 }
 0x38a   :  { %v672_v55 = vpop.permute.xlu0 %671 }
 0x38b   :  { %v677_v57 = vmul.f32 %v672_v55, %v649_v56  ;;  %1004 = vmatmul.mubr.msk.bf16.vlgmr.msra.gmra.mrb[20].mxu0 %vm103_vm0, %v680_v54 }
 0x38d   :  { %v681_v58 = vpack.c.bf16 %v677_v57, %v677_v57 }
 0x38f   :  { %1010 = vmatmul.mubr.msk.bf16.vlgmr.msra.gmra.mrb[20].mxu1 %vm103_vm0, %v681_v58 }
 0x456   :  { %v726_v59 = vpop.f32.mrb[16].mxu0 }
 0x457   :  { %v993_v60 = vpop.f32.mrb[17].mxu0  ;;  %v871_v1 = vsel %vm870_vm4, %v726_v59, 0.0 }
 0x458   :  { %v729_v61 = vpop.f32.mrb[18].mxu0 }
 0x459   :  { %v994_v62 = vpop.f32.mrb[19].mxu0 }
 0x45a   :  { %v772_v63 = vpop.f32.mrb[16].mxu1 }
 0x45b   :  { %v872_v2 = vsel %vm870_vm4, %v772_v63, 0.0  ;;  %v999_v0 = vpop.f32.mrb[17].mxu1 }
 0x45c   :  { %v873_v3 = vadd.f32 %v872_v2, %v871_v1  ;;  %v775_v4 = vpop.f32.mrb[18].mxu1 }
 0x45d   :  { %v1000_v5 = vpop.f32.mrb[19].mxu1 }
 0x45e   :  { %v818_v6 = vpop.f32.mrb[20].mxu0 }
 0x45f   :  { %v874_v7 = vsel %vm870_vm4, %v818_v6, 0.0  ;;  %v1005_v8 = vpop.f32.mrb[21].mxu0 }
 0x460   :  { %v875_v9 = vadd.f32 %v874_v7, %v873_v3  ;;  %v821_v10 = vpop.f32.mrb[22].mxu0 }
 0x461   :  { %v1006_v11 = vpop.f32.mrb[23].mxu0 }
 0x462   :  { %v864_v12 = vpop.f32.mrb[20].mxu1 }
 0x463   :  { %v876_v13 = vsel %vm870_vm4, %v864_v12, 0.0  ;;  %v1011_v14 = vpop.f32.mrb[21].mxu1 }
 0x464   :  { %v877_v15 = vadd.f32 %v876_v13, %v875_v9  ;;  %v867_v16 = vpop.f32.mrb[22].mxu1 }
 0x465   :  { %v1012_v17 = vpop.f32.mrb[23].mxu1 }
 0x466   :  { %878 = vst.msk [vmem:[#allocation14] sm:$0xff] %vm870_vm4, %v877_v15 }
 0x467   :  { %1172 = shalt.err (!%p1169_p2)
}
 0x468   :  { %s1173_s3 = scalar_lea.hbm %s1500_s5, 128 }
 0x469   :  { %p1174_p3 = scmp.ne.s32.totalorder %s1500_s5, %s1173_s3  ;;  %p1177_p4 = scmp.lt.u32.totalorder %s1173_s3, %s1500_s5 }
 0x46b   :  { %p1179_p5 = pnand %p1177_p4, %p1174_p3 }
 0x46d   :  { %1182 = shalt.err (!%p1179_p5)
}
 0x46e   :  { %888 = dma.vmem_to_hbm [thread:$0]  %s886_s30, 128, %s1500_s5, [#allocation7]  }
 0x46f   :  { %1189 = dma.done.wait [#allocation7], 128  }
 0x470   :  { %1190 = vsyncadd [#allocation7], 4294967168 }
 0x471   :  { %892 = vsyncpa [#allocation6], 1 }
 0x472   :  { %893 = vsyncpa [#allocation9], 1 }
 0x473   :  { %894 = vsyncpa [#allocation12], 1 }
 0x474   :  { %895 = vsyncpa [#allocation7], 1 }

</bundles_post_ra>
